<compile_context>
chip_gen: v5e
topology: v5e:2x2
jax: 0.10.0
libtpu: 0.0.40
codegen_flags: <defaults>
</compile_context>

<pallas_src>
import jax
import jax.numpy as jnp
from jax.experimental import pallas as pl
from jax.experimental.pallas import tpu as pltpu

_LANE = 128                          # vreg lane width
_SUBLANE = 8                         # f32 sublane count of a vreg
_TARGET_TILE_BYTES = 2 * 1024 * 1024  # ~2 MiB tiles: near HBM roofline, VMEM-safe


def _drop_path_kernel(scale_ref, x_ref, o_ref):
    # scale_ref: (Rb, 1)  per-sample scale (0.0 dropped, 1/keep_prob kept)
    # x_ref/o_ref: (Rb, Fc) activation tile for Rb samples.
    o_ref[...] = x_ref[...] * scale_ref[...]


def _pick_tiles(B: int, F: int, itemsize: int):
    """Pick (row_block, feature_block) aiming at ~_TARGET_TILE_BYTES tiles."""
    # Row (sublane) block: full batch when B <= 8 (full-dim exemption from the
    # (8,128) rule); otherwise a multiple of 8 grown toward the target tile.
    if B <= _SUBLANE:
        Rb = B
    else:
        row_bytes = max(F * itemsize, 1)
        want_rows = max(_TARGET_TILE_BYTES // row_bytes, 1)
        Rb = min(B, max(_SUBLANE, (want_rows // _SUBLANE) * _SUBLANE))

    # Feature (lane) block: full feature dim when it fits the budget (also the
    # full-dim exemption), otherwise a lane-dense (multiple of 128) tile.
    # Non-divisible boundary blocks are handled by Pallas' automatic masking,
    # so no jnp.pad / output slicing copies are needed.
    fc_budget = max(
        _LANE,
        (_TARGET_TILE_BYTES // max(Rb * itemsize, 1)) // _LANE * _LANE,
    )
    Fc = F if F <= fc_budget else fc_budget
    return Rb, Fc


def drop_path_pallas(x, key, drop_prob: float = 0.0, training: bool = False,
                     scale_by_keep: bool = True):
    """Pallas implementation of timm-style drop_path (stochastic depth)."""
    if drop_prob == 0.0 or not training:
        return x

    keep_prob = 1.0 - drop_prob
    orig_shape = x.shape
    B = int(orig_shape[0])
    F = 1
    for d in orig_shape[1:]:
        F *= int(d)

    # Per-sample Bernoulli keep mask -> per-sample scale (B, 1).  Computed once
    # here so the kernel is a single broadcasted multiply.
    keep_mask = jax.random.bernoulli(key, p=keep_prob, shape=(B,))
    inv_keep = (1.0 / keep_prob) if (keep_prob > 0.0 and scale_by_keep) else 1.0
    scale = (keep_mask.astype(jnp.float32) * jnp.float32(inv_keep)).astype(x.dtype)
    scale = scale.reshape(B, 1)

    x2 = x.reshape(B, F)
    itemsize = jnp.dtype(x2.dtype).itemsize
    Rb, Fc = _pick_tiles(B, F, itemsize)

    grid = (pl.cdiv(B, Rb), pl.cdiv(F, Fc))

    out = pl.pallas_call(
        _drop_path_kernel,
        out_shape=jax.ShapeDtypeStruct((B, F), x2.dtype),
        grid_spec=pltpu.PrefetchScalarGridSpec(
            num_scalar_prefetch=0,
            grid=grid,
            in_specs=[
                pl.BlockSpec((Rb, 1), lambda i, j: (i, 0)),    # per-sample scale
                pl.BlockSpec((Rb, Fc), lambda i, j: (i, j)),   # activations
            ],
            out_specs=pl.BlockSpec((Rb, Fc), lambda i, j: (i, j)),
        ),
        compiler_params=pltpu.CompilerParams(
            # Both axes independent -> shard across v7x's two TensorCores.
            dimension_semantics=("parallel", "parallel"),
        ),
    )(scale, x2)

    return out.reshape(orig_shape)


def _reference(x, key, drop_prob, scale_by_keep=True):
    keep_prob = 1.0 - drop_prob
    mask = jax.random.bernoulli(key, p=keep_prob, shape=(x.shape[0],))
    r = mask.astype(x.dtype)
    if keep_prob > 0.0 and scale_by_keep:
        r = r / jnp.asarray(keep_prob, x.dtype)
    return x * r.reshape((x.shape[0],) + (1,) * (x.ndim - 1))


if __name__ == "__main__":
    # DropPath has no learned parameters; drop_prob / scale_by_keep are config.
    drop_prob = 0.25
    scale_by_keep = True

    key = jax.random.PRNGKey(0)
    kx, kmask, kx2 = jax.random.split(key, 3)

    # Small NCHW input consistent with typical residual-block activations.
    x = jax.random.normal(kx, (2, 4, 16, 16), dtype=jnp.float32)

    # Training mode -> kernel path is exercised.
    y = drop_path_pallas(x, kmask, drop_prob=drop_prob, training=True,
                         scale_by_keep=scale_by_keep)
    y = jax.block_until_ready(y)
    ref = _reference(x, kmask, drop_prob, scale_by_keep)
    assert jnp.allclose(y, ref, atol=1e-6), "mismatch vs reference (f32)"

    # bf16 path with a batch large enough to exercise the row (sublane) tiling
    # and a non-128-multiple feature dim (boundary masking path).
    xb = jax.random.normal(kx2, (16, 3, 10, 10), dtype=jnp.bfloat16)
    yb = drop_path_pallas(xb, kmask, drop_prob=drop_prob, training=True,
                          scale_by_keep=scale_by_keep)
    yb = jax.block_until_ready(yb)
    refb = _reference(xb, kmask, drop_prob, scale_by_keep)
    assert jnp.allclose(yb.astype(jnp.float32), refb.astype(jnp.float32),
                        atol=1e-2), "mismatch vs reference (bf16)"

    # Eval mode / drop_prob == 0 -> identity (matches PyTorch short-circuit).
    y_eval = drop_path_pallas(x, kmask, drop_prob=drop_prob, training=False)
    assert jnp.array_equal(y_eval, x)
    y_zero = drop_path_pallas(x, kmask, drop_prob=0.0, training=True)
    assert jnp.array_equal(y_zero, x)

    print("KERNEL_OK")
</pallas_src>

<mosaic_0001>
module attributes {stable_mosaic.version = 11 : i64} {
  func.func @_drop_path_kernel(%arg0: i32, %arg1: i32, %arg2: memref<2x1xf32, #tpu.memory_space<vmem>>, %arg3: memref<2x1024xf32, #tpu.memory_space<vmem>>, %arg4: memref<2x1024xf32, #tpu.memory_space<vmem>>) attributes {dimension_semantics = [#tpu.dimension_semantics<parallel>, #tpu.dimension_semantics<parallel>], iteration_bounds = array<i64: 1, 1>, scalar_prefetch = 0 : i64, scratch_operands = 0 : i64, tpu.core_type = #tpu.core_type<tc>, window_params = [{transform_indices = @transform_0, window_bounds = array<i64: 2, 1>}, {transform_indices = @transform_1, window_bounds = array<i64: 2, 1024>}, {transform_indices = @transform_2, window_bounds = array<i64: 2, 1024>}]} {
    %c0 = arith.constant 0 : index
    %c0_0 = arith.constant 0 : index
    %0 = vector.load %arg3[%c0, %c0_0] : memref<2x1024xf32, #tpu.memory_space<vmem>>, vector<2x1024xf32>
    %c0_1 = arith.constant 0 : index
    %c0_2 = arith.constant 0 : index
    %1 = vector.load %arg2[%c0_1, %c0_2] : memref<2x1xf32, #tpu.memory_space<vmem>>, vector<2x1xf32>
    %2 = vector.broadcast %1 : vector<2x1xf32> to vector<2x1024xf32>
    %3 = arith.mulf %0, %2 : vector<2x1024xf32>
    %c0_3 = arith.constant 0 : index
    %c0_4 = arith.constant 0 : index
    %4 = vector.load %arg4[%c0_3, %c0_4] : memref<2x1024xf32, #tpu.memory_space<vmem>>, vector<2x1024xf32>
    tpu.vector_store %arg4[%c0_3, %c0_4], %3 {strides = array<i32>} : memref<2x1024xf32, #tpu.memory_space<vmem>>, vector<2x1024xf32>,
    return
  }
  func.func @transform_0(%arg0: i32, %arg1: i32) -> (i32, i32) {
    %c0_i32 = arith.constant 0 : i32
    %c0_i32_0 = arith.constant 0 : i32
    return %arg0, %c0_i32 : i32, i32
  }
  func.func @transform_1(%arg0: i32, %arg1: i32) -> (i32, i32) {
    %c0_i32 = arith.constant 0 : i32
    return %arg0, %arg1 : i32, i32
  }
  func.func @transform_2(%arg0: i32, %arg1: i32) -> (i32, i32) {
    %c0_i32 = arith.constant 0 : i32
    return %arg0, %arg1 : i32, i32
  }
}

</mosaic_0001>

<bundles_post_ra>
// kernel: tpu_custom_call.1
= control target key start
LH: loop header
LB: loop body
LE: loop exit
PB: predicated region body
PF: predicated region fallthrough
CT: control target
= control target key end

     0   :  { %7 = vsyncpa [#allocation3], 0  ;;  %s144_s0 = inlined_call_operand.vmem [shape: f32[2,1], index: 0, kind: input, shape index: {}]   ;;  %s145_s1 = inlined_call_operand.hbm [shape: f32[2,1024], index: 1, kind: input, shape index: {}]   ;;  %s146_s2 = inlined_call_operand.hbm [shape: f32[2,1024], index: 2, kind: output, shape index: {}]  }
   0x1   :  { %8 = vsyncpa [#allocation4], 0  ;;  %s16_s11 = sshll.u32 %s145_s1, 4  ;;  %s116_s12 = smov [#allocation2]   ;;  %s17_s11 = int_to_ptr.hbm [resolvable:$true] %s16_s11 }
   0x2   :  { %s18_s13 = sshll.u32 %s116_s12, 4  ;;  %s19_s13 = int_to_ptr.vmem [resolvable:$true] %s18_s13 }
   0x3   :  { %21 = dma.hbm_to_vmem [thread:$0]  %s17_s11, 256, %s19_s13, [#allocation3]  }
   0x4   :  { %112 = dma.done.wait [#allocation3], 256  }
   0x5   :  { %113 = vsyncadd [#allocation3], 4294967040  ;;  %v117_v0 = vmov 0   ;;  %v28_v1 = vld [vmem:[%s144_s0] sm:$0x3]  ;;  %v27_v7 = vld [vmem:[#allocation2 + $0x8] sm:$0xff] }
   0x6   :  { %63 = vset.pattern.permute.xlu0 %v117_v0  ;;  %v118_v2 = vmov 269488144   ;;  %v26_v6 = vld [vmem:[#allocation2] sm:$0xff]  ;;  %s119_s1 = smov [#allocation5]   ;;  %s49_s19 = sshll.u32 %s146_s2, 4  ;;  %s50_s19 = int_to_ptr.hbm [resolvable:$true] %s49_s19 }
   0x7   :  { %31 = vperm.xlu0 %63, %v28_v1   ;;  %v34_v3 = vunpack.c.l.s4 %v118_v2  ;;  %s47_s16 = sshll.u32 %s119_s1, 4  ;;  %s48_s16 = int_to_ptr.vmem [resolvable:$true] %s47_s16 }
   0x9   :  { %v35_v4 = vunpack.c.0.s8 %v34_v3 }
  0x79   :  { %v32_v5 = vpop.permute.xlu0 %31 }
  0x7a   :  { %v36_v8 = vperm.slane %v32_v5, %v35_v4 }
  0x7c   :  { %v38_v9 = vmul.f32 %v36_v8, %v26_v6  ;;  %v39_v10 = vmul.f32 %v36_v8, %v27_v7 }
  0x7e   :  { %40 = vst [vmem:[#allocation5] sm:$0xff] %v38_v9 }
  0x7f   :  { %41 = vst [vmem:[#allocation5 + $0x8] sm:$0xff] %v39_v10 }
  0x80   :  { %52 = dma.vmem_to_hbm [thread:$0]  %s48_s16, 256, %s50_s19, [#allocation4]  }
  0x81   :  { %114 = dma.done.wait [#allocation4], 256  }
  0x82   :  { %115 = vsyncadd [#allocation4], 4294967040 }
  0x83   :  { %57 = vsyncpa [#allocation3], 1 }
  0x84   :  { %58 = vsyncpa [#allocation4], 1 }

</bundles_post_ra>
